<compile_context>
chip_gen: v5e
topology: v5e:2x2
jax: 0.10.0
libtpu: 0.0.40
codegen_flags: <defaults>
</compile_context>

<pallas_src>
import functools

import jax
import jax.numpy as jnp
from jax.experimental import pallas as pl
from jax.experimental.pallas import tpu as pltpu

_LANES = 128
_SUBLANES = 8
_MAX_TILE_BYTES = 4 * 1024 * 1024   # ~4 MiB of wire bytes per input tile
_MIN_PALLAS_NUMEL = 1 << 20         # below this, -jnp.mean is faster than a kernel launch
_NUM_PARTIAL_ACCS = 8               # independent accumulator vreg chains (ILP on the VPU)


def _wgan_gen_loss_kernel(fake_ref, out_ref, acc_ref, *, total_rows, tile_rows,
                          blocks_per_core, nacc, apply_mask):
    # fake_ref: (tile_rows, 128) tile of the flattened disc_fake (input dtype).
    # out_ref:  (1, 8, 128) f32 per-core partial-sum block.
    # acc_ref:  (nacc, 8, 128) f32 VMEM partial accumulators, persist across inner steps.
    c = pl.program_id(0)   # TensorCore shard (parallel axis)
    i = pl.program_id(1)   # streaming step within this shard (arbitrary axis)

    @pl.when(i == 0)
    def _():
        acc_ref[...] = jnp.zeros_like(acc_ref)

    groups = tile_rows // (_SUBLANES * nacc)

    def fold(tile_f32):
        # (tile_rows, 128) -> (groups, nacc, 8, 128) -> sum over groups.
        # Produces nacc independent (8,128) vreg reduction chains (pure VPU adds,
        # no cross-lane work), which fill the 4 VALU slots under the tile's DMA.
        return jnp.sum(tile_f32.reshape(groups, nacc, _SUBLANES, _LANES), axis=0)

    tile = fake_ref[...].astype(jnp.float32)   # f32 accumulation (no-op for f32 inputs)

    if apply_mask:
        # Unclamped global block index; only blocks whose row range extends past
        # total_rows (at most 2 grid steps total) pay the masking cost.
        b = c * blocks_per_core + i
        block_start = b * tile_rows
        is_edge = block_start + tile_rows > total_rows

        @pl.when(jnp.logical_not(is_edge))
        def _():
            acc_ref[...] += fold(tile)

        @pl.when(is_edge)
        def _():
            # Rows at/after (total_rows - block_start) are padding / stale VMEM
            # (or the whole tile for the duplicated clamped block): zero them.
            # The iota is loop-invariant; only the scalar limit depends on b.
            row_ids = jax.lax.broadcasted_iota(jnp.int32, (tile_rows, _LANES), 0)
            limit = total_rows - block_start
            acc_ref[...] += fold(jnp.where(row_ids < limit, tile, 0.0))
    else:
        acc_ref[...] += fold(tile)

    @pl.when(i == pl.num_programs(1) - 1)
    def _():
        # Collapse the nacc partial accumulators (VPU adds); the final cross-lane/
        # sublane reduction happens in the wrapper on a tiny partials array.
        out_ref[0] = jnp.sum(acc_ref[...], axis=0)


def wgan_generator_loss(disc_fake, disc_real=None, *,
                        min_pallas_numel=_MIN_PALLAS_NUMEL,
                        max_tile_bytes=_MAX_TILE_BYTES):
    """Computes -mean(disc_fake). disc_real is accepted but unused (matches PyTorch)."""
    del disc_real  # unused by the WGAN generator loss

    numel = disc_fake.size
    if numel < min_pallas_numel:
        # Pure-JAX fast path: at small sizes the pallas_call fixed cost dominates.
        return -jnp.mean(disc_fake.astype(jnp.float32))

    x = disc_fake.reshape(-1)  # keep original dtype on the wire
    if numel % _LANES != 0:
        # Rare: pad by < 128 zeros (this is an HBM copy; common NCHW sizes reshape
        # with no copy). Zeros do not change the sum.
        x = jnp.pad(x, (0, _LANES - numel % _LANES))
    rows = x.size // _LANES
    x2d = x.reshape(rows, _LANES)

    itemsize = x2d.dtype.itemsize
    # ~4 MiB of wire bytes per tile regardless of dtype (8192 rows f32, 16384 bf16).
    max_tile_rows = max(_SUBLANES,
                        (max_tile_bytes // (_LANES * itemsize)) // _SUBLANES * _SUBLANES)
    rows_padded = pl.cdiv(rows, _SUBLANES) * _SUBLANES
    tile_rows = min(max_tile_rows, rows_padded)

    num_blocks = pl.cdiv(rows, tile_rows)
    # v7x has 2 TensorCores, each with its own DMA path: shard the row range across
    # them via a leading "parallel" axis. Serial (and nearly free) on v5e/v6e (1 TC).
    num_cores = 2 if num_blocks >= 4 else 1
    blocks_per_core = pl.cdiv(num_blocks, num_cores)
    # If the tiling covers the rows exactly, emit no mask code at all.
    apply_mask = (num_cores * blocks_per_core * tile_rows) != rows

    nacc = _NUM_PARTIAL_ACCS
    while (tile_rows // _SUBLANES) % nacc != 0:
        nacc //= 2

    kernel = functools.partial(
        _wgan_gen_loss_kernel,
        total_rows=rows,
        tile_rows=tile_rows,
        blocks_per_core=blocks_per_core,
        nacc=nacc,
        apply_mask=apply_mask,
    )

    def in_index_map(c, i):
        b = c * blocks_per_core + i
        # Clamp the trailing duplicated block (odd block count split over two cores)
        # so its DMA stays in bounds; the kernel masks its contribution to zero.
        return (jnp.minimum(b, num_blocks - 1), 0)

    partials = pl.pallas_call(
        kernel,
        out_shape=jax.ShapeDtypeStruct((num_cores, _SUBLANES, _LANES), jnp.float32),
        grid_spec=pltpu.PrefetchScalarGridSpec(
            num_scalar_prefetch=0,
            grid=(num_cores, blocks_per_core),
            in_specs=[pl.BlockSpec((tile_rows, _LANES), in_index_map)],
            out_specs=pl.BlockSpec((1, _SUBLANES, _LANES), lambda c, i: (c, 0, 0)),
            scratch_shapes=[pltpu.VMEM((nacc, _SUBLANES, _LANES), jnp.float32)],
        ),
        compiler_params=pltpu.CompilerParams(
            dimension_semantics=("parallel", "arbitrary"),
            vmem_limit_bytes=40 * 1024 * 1024,  # covers double-buffered 4 MiB tiles + f32 temps
        ),
        cost_estimate=pl.CostEstimate(
            flops=numel,
            transcendentals=0,
            bytes_accessed=numel * itemsize + num_cores * _SUBLANES * _LANES * 4,
        ),
    )(x2d)

    # Tiny epilogue: sum num_cores*8*128 partials and fold in the static -1/numel.
    return jnp.sum(partials) * (-1.0 / float(numel))


if __name__ == "__main__":
    key = jax.random.PRNGKey(0)
    k_fake, k_real, k_fake2 = jax.random.split(key, 3)

    # Discriminator outputs for a small batch (patch-GAN style scores).
    disc_fake = jax.random.normal(k_fake, (2, 4, 16, 16), dtype=jnp.float32)
    disc_real = jax.random.normal(k_real, (2, 4, 16, 16), dtype=jnp.float32)
    ref = -jnp.mean(disc_fake)

    # 1) Default call: tiny input takes the pure-JAX fast path.
    loss_fast = jax.block_until_ready(wgan_generator_loss(disc_fake, disc_real))
    assert jnp.allclose(loss_fast, ref, atol=1e-5, rtol=1e-5), (loss_fast, ref)

    # 2) Force the Pallas kernel on the same small input (single block, no mask).
    loss_kernel = jax.block_until_ready(
        wgan_generator_loss(disc_fake, disc_real, min_pallas_numel=0))
    assert jnp.allclose(loss_kernel, ref, atol=1e-5, rtol=1e-5), (loss_kernel, ref)

    # 3) Exercise multi-block streaming, the 2-core "parallel" split and the gated
    #    tail mask with small tiles so the test stays tiny (252 rows -> 8 blocks of 32).
    disc_fake2 = jax.random.normal(k_fake2, (2, 4, 63, 64), dtype=jnp.float32)
    ref2 = -jnp.mean(disc_fake2)
    loss2 = jax.block_until_ready(
        wgan_generator_loss(disc_fake2, None, min_pallas_numel=0,
                            max_tile_bytes=16 * 1024))
    assert jnp.allclose(loss2, ref2, atol=1e-5, rtol=1e-5), (loss2, ref2)

    print("KERNEL_OK")
</pallas_src>

<mosaic_0001>
module attributes {stable_mosaic.version = 11 : i64} {
  func.func @_wgan_gen_loss_kernel(%arg0: i32, %arg1: i32, %arg2: memref<16x128xf32, #tpu.memory_space<vmem>>, %arg3: memref<1x8x128xf32, #tpu.memory_space<vmem>>, %arg4: memref<2x8x128xf32, #tpu.memory_space<vmem>>) attributes {dimension_semantics = [#tpu.dimension_semantics<parallel>, #tpu.dimension_semantics<arbitrary>], iteration_bounds = array<i64: 1, 1>, scalar_prefetch = 0 : i64, scratch_operands = 1 : i64, tpu.core_type = #tpu.core_type<tc>, window_params = [{transform_indices = @transform_0, window_bounds = array<i64: 16, 128>}, {transform_indices = @transform_1, window_bounds = array<i64: 1, 8, 128>}]} {
    %c0_i32 = arith.constant 0 : i32
    %0 = arith.cmpi eq, %arg1, %c0_i32 : i32
    %1 = arith.extui %0 : i1 to i32
    %c0_i32_0 = arith.constant 0 : i32
    %2 = arith.cmpi ne, %1, %c0_i32_0 : i32
    scf.if %2 {
      %cst_10 = arith.constant 0.000000e+00 : f32
      %12 = vector.broadcast %cst_10 : f32 to vector<2x8x128xf32>
      %c0_11 = arith.constant 0 : index
      %c0_12 = arith.constant 0 : index
      %c0_13 = arith.constant 0 : index
      %13 = vector.load %arg4[%c0_11, %c0_12, %c0_13] : memref<2x8x128xf32, #tpu.memory_space<vmem>>, vector<2x8x128xf32>
      tpu.vector_store %arg4[%c0_11, %c0_12, %c0_13], %12 {strides = array<i32>} : memref<2x8x128xf32, #tpu.memory_space<vmem>>, vector<2x8x128xf32>,
    } else {
    }
    %c0 = arith.constant 0 : index
    %c0_1 = arith.constant 0 : index
    %3 = vector.load %arg2[%c0, %c0_1] : memref<16x128xf32, #tpu.memory_space<vmem>>, vector<16x128xf32>
    %c0_2 = arith.constant 0 : index
    %c0_3 = arith.constant 0 : index
    %c0_4 = arith.constant 0 : index
    %4 = vector.load %arg4[%c0_2, %c0_3, %c0_4] : memref<2x8x128xf32, #tpu.memory_space<vmem>>, vector<2x8x128xf32>
    %5 = vector.shape_cast %3 : vector<16x128xf32> to vector<1x2x8x128xf32>
    %cst = arith.constant dense<0.000000e+00> : vector<2x8x128xf32>
    %6 = vector.multi_reduction <add>, %5, %cst [0] : vector<1x2x8x128xf32> to vector<2x8x128xf32>
    %7 = arith.addf %4, %6 : vector<2x8x128xf32>
    %c0_5 = arith.constant 0 : index
    %c0_6 = arith.constant 0 : index
    %c0_7 = arith.constant 0 : index
    %8 = vector.load %arg4[%c0_5, %c0_6, %c0_7] : memref<2x8x128xf32, #tpu.memory_space<vmem>>, vector<2x8x128xf32>
    tpu.vector_store %arg4[%c0_5, %c0_6, %c0_7], %7 {strides = array<i32>} : memref<2x8x128xf32, #tpu.memory_space<vmem>>, vector<2x8x128xf32>,
    %c0_i32_8 = arith.constant 0 : i32
    %9 = arith.cmpi eq, %arg1, %c0_i32_8 : i32
    %10 = arith.extui %9 : i1 to i32
    %c0_i32_9 = arith.constant 0 : i32
    %11 = arith.cmpi ne, %10, %c0_i32_9 : i32
    scf.if %11 {
      %c0_10 = arith.constant 0 : index
      %c0_11 = arith.constant 0 : index
      %c0_12 = arith.constant 0 : index
      %12 = vector.load %arg4[%c0_10, %c0_11, %c0_12] : memref<2x8x128xf32, #tpu.memory_space<vmem>>, vector<2x8x128xf32>
      %cst_13 = arith.constant dense<0.000000e+00> : vector<8x128xf32>
      %13 = vector.multi_reduction <add>, %12, %cst_13 [0] : vector<2x8x128xf32> to vector<8x128xf32>
      %c0_14 = arith.constant 0 : index
      %c0_15 = arith.constant 0 : index
      %c0_16 = arith.constant 0 : index
      %14 = vector.load %arg3[%c0_14, %c0_15, %c0_16] : memref<1x8x128xf32, #tpu.memory_space<vmem>>, vector<1x8x128xf32>
      %15 = vector.shape_cast %14 : vector<1x8x128xf32> to vector<8x128xf32>
      %16 = vector.shape_cast %13 : vector<8x128xf32> to vector<1x8x128xf32>
      tpu.vector_store %arg3[%c0_14, %c0_15, %c0_16], %16 {strides = array<i32>} : memref<1x8x128xf32, #tpu.memory_space<vmem>>, vector<1x8x128xf32>,
    } else {
    }
    return
  }
  func.func @transform_0(%arg0: i32, %arg1: i32) -> (i32, i32) {
    %c1_i32 = arith.constant 1 : i32
    %0 = arith.muli %arg0, %c1_i32 : i32
    %1 = arith.addi %0, %arg1 : i32
    %c0_i32 = arith.constant 0 : i32
    %2 = arith.minsi %1, %c0_i32 : i32
    %c0_i32_0 = arith.constant 0 : i32
    %c0_i32_1 = arith.constant 0 : i32
    return %2, %c0_i32_0 : i32, i32
  }
  func.func @transform_1(%arg0: i32, %arg1: i32) -> (i32, i32, i32) {
    %c0_i32 = arith.constant 0 : i32
    %c0_i32_0 = arith.constant 0 : i32
    %c0_i32_1 = arith.constant 0 : i32
    return %arg0, %c0_i32, %c0_i32_0 : i32, i32, i32
  }
}

</mosaic_0001>

<bundles_post_ra>
// kernel: tpu_custom_call.1
= control target key start
LH: loop header
LB: loop body
LE: loop exit
PB: predicated region body
PF: predicated region fallthrough
CT: control target
= control target key end

     0   :  { %6 = vsyncpa [#allocation4], 0  ;;  %s153_s0 = inlined_call_operand.hbm [shape: f32[16,128], index: 0, kind: input, shape index: {}]   ;;  %s154_s1 = inlined_call_operand.hbm [shape: f32[1,8,128], index: 1, kind: output, shape index: {}]  }
   0x1   :  { %7 = vsyncpa [#allocation5], 0  ;;  %s18_s8 = sshll.u32 %s153_s0, 4  ;;  %s133_s9 = smov [#allocation3]   ;;  %s19_s8 = int_to_ptr.hbm [resolvable:$true] %s18_s8 }
   0x2   :  { %s20_s10 = sshll.u32 %s133_s9, 4  ;;  %s134_s11 = smov 128   ;;  %s21_s10 = int_to_ptr.vmem [resolvable:$true] %s20_s10 }
   0x3   :  { %s135_s12 = smov 8  }
   0x4   :  { %26 = dma.hbm_to_vmem [thread:$0]  %s19_s8, 256, %s21_s10, [#allocation4], %s134_s11, %s134_s11, %s135_s12  }
   0x5   :  { %129 = dma.done.wait [#allocation4], 256  }
   0x6   :  { %130 = vsyncadd [#allocation4], 4294967040  ;;  %s136_s13 = smov [#allocation6]   ;;  %s65_s17 = sshll.u32 %s154_s1, 4  ;;  %v41_v0 = vld [vmem:[#allocation3] sm:$0xff]  ;;  %v42_v1 = vld [vmem:[#allocation3 + $0x8] sm:$0xff]  ;;  %s66_s17 = int_to_ptr.hbm [resolvable:$true] %s65_s17 }
   0x7   :  { %s63_s14 = sshll.u32 %s136_s13, 4  ;;  %v56_v2 = vadd.f32 %v42_v1, %v41_v0  ;;  %s64_s14 = int_to_ptr.vmem [resolvable:$true] %s63_s14 }
   0x9   :  { %57 = vst [vmem:[#allocation6] sm:$0xff] %v56_v2 }
   0xa   :  { %68 = dma.vmem_to_hbm [thread:$0]  %s64_s14, 128, %s66_s17, [#allocation5]  }
   0xb   :  { %131 = dma.done.wait [#allocation5], 128  }
   0xc   :  { %132 = vsyncadd [#allocation5], 4294967168 }
   0xd   :  { %73 = vsyncpa [#allocation4], 1 }
   0xe   :  { %74 = vsyncpa [#allocation5], 1 }

</bundles_post_ra>
